<compile_context>
chip_gen: v7x
topology: tpu7x:2x2x1
jax: 0.10.0
libtpu: 0.0.40
codegen_flags: <defaults>
</compile_context>

<pallas_src>
import functools

import jax
import jax.numpy as jnp
from jax.experimental import pallas as pl
from jax.experimental.pallas import tpu as pltpu


# ------------------------------- helpers ------------------------------- #
def _round_up(a, b):
    return ((a + b - 1) // b) * b


def _block_vmem_bytes(shape, dtype):
    """Crude padded VMEM footprint of one block (sublane/lane rounding)."""
    itemsize = jnp.dtype(dtype).itemsize
    if len(shape) == 1:
        return _round_up(shape[0] * itemsize, 512)
    lead = 1
    for dim in shape[:-2]:
        lead *= dim
    sub = _round_up(shape[-2], 32 // itemsize)
    lane = _round_up(shape[-1], 128)
    return lead * sub * lane * itemsize


def _vmem_capacity_bytes(default=64 << 20):
    try:
        info = pltpu.get_tpu_info()
        cap = getattr(info, "vmem_capacity_bytes", None)
        if cap:
            return int(cap)
    except Exception:
        pass
    return default


# ----------------------------- Pallas kernel ----------------------------- #
def _conv_kernel(x_ref, w_ref, ss_ref, o_ref, *, KH, stride, dilation, TOW, TM, relu):
    """One (spatial-tile, Cout-tile) grid cell of the kw-packed implicit-im2col conv.

    x_ref : (1, s, TIH*TOW, KW*Cin)  kw-packed, row-phase-decomposed input window (compute dtype)
    w_ref : (KH, KW*Cin, TCO)        per-kh weights (compute dtype)
    ss_ref: (2, TCO)                 f32 [scale; shift] per output channel
    o_ref : (1, TM, TCO)             output tile (lane-dense in TCO)
    """
    acc = jnp.zeros((TM, o_ref.shape[-1]), jnp.float32)
    for kh in range(KH):
        r = kh * dilation
        phase, dr = r % stride, r // stride
        # Static contiguous window: K = Cin*KW per MXU push, a single dot per kh tap row.
        patch = x_ref[0, phase, pl.ds(dr * TOW, TM), :]
        acc = acc + jnp.dot(patch, w_ref[kh], preferred_element_type=jnp.float32)
    # Fused epilogue: per-channel scale/shift (bias or folded eval-mode BN), then ReLU.
    acc = acc * ss_ref[0:1, :] + ss_ref[1:2, :]
    if relu:
        acc = jnp.maximum(acc, 0.0)
    o_ref[0] = acc.astype(o_ref.dtype)


# ----------------------------- BasicConv wrapper ----------------------------- #
def basic_conv(x, weight, bias=None, *, stride=1, padding=0, dilation=1,
               relu=True, bn_params=None, up_size=None,
               compute_dtype=jnp.bfloat16, out_dtype=None):
    """Forward pass of BasicConv. x: [N, Cin, H, W] NCHW, weight: [Cout, Cin, KH, KW].

    NOTE: compute_dtype=bfloat16 (MXU bf16 x bf16 -> f32) deviates from PyTorch's f32 Conv2d
    numerics; pass compute_dtype=jnp.float32 for closer parity.  BN (if given) is folded in
    eval mode.  out_dtype=bfloat16 halves output HBM writeback if the model tolerates it.
    """
    N, Cin, H, W = x.shape
    Cout, Cin_w, KH, KW = weight.shape
    assert Cin_w == Cin, "groups != 1 not supported"  # TODO(synk): grouped conv not implemented
    s, d, p = int(stride), int(dilation), int(padding)
    if out_dtype is None:
        out_dtype = x.dtype

    OH = (H + 2 * p - d * (KH - 1) - 1) // s + 1
    OW = (W + 2 * p - d * (KW - 1) - 1) // s + 1

    # ---- output-channel tiling: lane-dense stores; 256-wide tiles feed the v6e/v7x MXU width ----
    Cout_p = 128 if Cout <= 128 else _round_up(Cout, 256)
    TCO = min(Cout_p, 256)
    CT = Cout_p // TCO

    # ---- spatial tiling: keep the f32 accumulator <= ~128 KiB so it lives in vregs (no spill) ----
    ACC_BUDGET = 128 * 1024
    tm_target = max(128, ACC_BUDGET // (4 * TCO))     # 256 @ TCO=128, 128 @ TCO=256
    TW = int(pl.cdiv(OW, tm_target))
    TOW = int(pl.cdiv(OW, TW))                        # no halo needed in W: kw folded into channels
    OWp = TW * TOW
    TOH = max(1, min(OH, tm_target // TOW))
    TOH = int(pl.cdiv(OH, pl.cdiv(OH, TOH)))          # rebalance to minimize padded rows
    T = int(pl.cdiv(OH, TOH))
    OH_pad = T * TOH
    TM = TOH * TOW

    maxdr = ((KH - 1) * d) // s                       # row halo (in row-phase coordinates)
    TIH = TOH + maxdr
    KWC = KW * Cin

    # ---- host-side operand prep -------------------------------------------------------------
    Hp = max((OH_pad + maxdr) * s, H + p)
    Wp = max((OWp - 1) * s + (KW - 1) * d + 1, W + p)
    x_nhwc = jnp.transpose(x, (0, 2, 3, 1)).astype(compute_dtype)
    xpad = jnp.pad(x_nhwc, ((0, 0), (p, Hp - H - p), (p, Wp - W - p), (0, 0)))

    # kw-pack (folds the column taps and column stride): xkw[n,r,ow,kw*Cin+c] = xpad[n,r,ow*s+kw*d,c]
    cols = [xpad[:, :, kw * d: kw * d + (OWp - 1) * s + 1: s, :] for kw in range(KW)]
    xkw = jnp.concatenate(cols, axis=-1) if KW > 1 else cols[0]      # [N, Hp, OWp, KWC]

    # Row-phase decomposition + tile-local row windows (halo rows duplicated host-side) so each
    # grid step only DMAs its own window: xwin[nt, a, i*TOW+owl, :] = xkw[n, (t*TOH+i)*s+a, tw*TOW+owl, :]
    ridx = ((jnp.arange(T)[:, None, None] * TOH + jnp.arange(TIH)[None, None, :]) * s
            + jnp.arange(s)[None, :, None])                           # [T, s, TIH]
    xg = xkw[:, ridx]                                                 # [N, T, s, TIH, OWp, KWC]
    xg = xg.reshape(N, T, s, TIH, TW, TOW, KWC).transpose(0, 1, 4, 2, 3, 5, 6)
    xwin = xg.reshape(N * T * TW, s, TIH * TOW, KWC)

    # ---- weights / epilogue constants ---------------------------------------------------------
    w_kh = jnp.transpose(weight, (2, 3, 1, 0)).reshape(KH, KWC, Cout)  # (kh, kw*Cin+c, co)
    w_kh = jnp.pad(w_kh, ((0, 0), (0, 0), (0, Cout_p - Cout))).astype(compute_dtype)

    b = jnp.zeros((Cout,), jnp.float32) if bias is None else bias.astype(jnp.float32)
    if bn_params is None:
        scale = jnp.ones((Cout,), jnp.float32)
        shift = b
    else:
        # Eval-mode BN folded into the epilogue: BN(conv + b) = conv*inv + (b - mean)*inv + beta.
        g = bn_params["gamma"].astype(jnp.float32)
        beta = bn_params["beta"].astype(jnp.float32)
        mean = bn_params["mean"].astype(jnp.float32)
        var = bn_params["var"].astype(jnp.float32)
        inv = g / jnp.sqrt(var + bn_params["eps"])
        scale = inv
        shift = (b - mean) * inv + beta
    ss = jnp.pad(jnp.stack([scale, shift]), ((0, 0), (0, Cout_p - Cout)))

    # ---- generation-aware VMEM budget (double-buffered blocks + headroom) ----------------------
    est = (2 * _block_vmem_bytes((s, TIH * TOW, KWC), compute_dtype)
           + 2 * _block_vmem_bytes((KH, KWC, TCO), compute_dtype)
           + 2 * _block_vmem_bytes((2, TCO), jnp.float32)
           + 2 * _block_vmem_bytes((TM, TCO), out_dtype)
           + (4 << 20))
    cap = _vmem_capacity_bytes()                      # 128 MiB on v5e/v6e, 64 MiB on v7x
    vmem_limit = int(min(max(2 * est, 32 << 20), cap * 3 // 4))

    # ---- pallas call ---------------------------------------------------------------------------
    kernel = functools.partial(_conv_kernel, KH=KH, stride=s, dilation=d,
                               TOW=TOW, TM=TM, relu=relu)
    # Grid axis 0 (batch x spatial tiles) is 'parallel' (megacore shards it; blocks are tile-local,
    # so no whole-image duplication per core).  Cout tiles iterate innermost with a constant x
    # block index -> the input window stays resident across them.
    out = pl.pallas_call(
        kernel,
        out_shape=jax.ShapeDtypeStruct((N * T * TW, TM, Cout_p), out_dtype),
        grid=(N * T * TW, CT),
        in_specs=[
            pl.BlockSpec((1, s, TIH * TOW, KWC), lambda i, c: (i, 0, 0, 0)),
            pl.BlockSpec((KH, KWC, TCO), lambda i, c: (0, 0, c)),
            pl.BlockSpec((2, TCO), lambda i, c: (0, c)),
        ],
        out_specs=pl.BlockSpec((1, TM, TCO), lambda i, c: (i, 0, c)),
        compiler_params=pltpu.CompilerParams(
            dimension_semantics=("parallel", "arbitrary"),
            vmem_limit_bytes=vmem_limit),
    )(xwin, w_kh, ss)

    # ---- back to NCHW at the module boundary ---------------------------------------------------
    y = out.reshape(N, T, TW, TOH, TOW, Cout_p).transpose(0, 1, 3, 2, 4, 5)
    y = y.reshape(N, OH_pad, OWp, Cout_p)[:, :OH, :OW, :Cout]
    y = jnp.transpose(y, (0, 3, 1, 2))

    if up_size is not None:
        if isinstance(up_size, int):
            up_size = (up_size, up_size)
        # TODO(synk): jax.image.resize bilinear == align_corners=False; legacy torch F.upsample
        # (mode='bilinear') defaulted to align_corners=True, so this path is not bit-compatible.
        y = jax.image.resize(y, (N, Cout, up_size[0], up_size[1]), method="bilinear")
    return y


# ----------------------------- demo / check ----------------------------- #
if __name__ == "__main__":
    key = jax.random.PRNGKey(0)
    k_w, k_b, k_x = jax.random.split(key, 3)

    # BasicConv(in_planes=4, out_planes=8, kernel_size=3, stride=1, padding=1)
    N, Cin, H, W = 2, 4, 16, 16
    Cout, KH, KW = 8, 3, 3
    stride, padding = 1, 1

    x = jax.random.normal(k_x, (N, Cin, H, W), dtype=jnp.float32)
    weight = jax.random.normal(k_w, (Cout, Cin, KH, KW), dtype=jnp.float32) * 0.1
    bias = jax.random.normal(k_b, (Cout,), dtype=jnp.float32) * 0.1

    conv_fn = jax.jit(lambda xx, ww, bb: basic_conv(
        xx, ww, bb, stride=stride, padding=padding, relu=True))
    y = conv_fn(x, weight, bias)
    y = jax.block_until_ready(y)

    # Reference: XLA conv on bf16-rounded operands (the kernel's MXU path is bf16 x bf16 -> f32).
    xr = x.astype(jnp.bfloat16).astype(jnp.float32)
    wr = weight.astype(jnp.bfloat16).astype(jnp.float32)
    ref = jax.lax.conv_general_dilated(
        xr, wr, window_strides=(stride, stride),
        padding=[(padding, padding), (padding, padding)],
        dimension_numbers=("NCHW", "OIHW", "NCHW"),
        precision=jax.lax.Precision.HIGHEST)
    ref = jnp.maximum(ref + bias.reshape(1, Cout, 1, 1), 0.0)

    assert y.shape == (N, Cout, H, W)
    assert jnp.allclose(y, ref, atol=1e-2, rtol=1e-2), float(jnp.max(jnp.abs(y - ref)))
    print("KERNEL_OK")
</pallas_src>

<mosaic_0001>
module attributes {stable_mosaic.version = 11 : i64} {
  func.func @_conv_kernel(%arg0: i32, %arg1: i32, %arg2: memref<1x1x288x12xbf16, #tpu.memory_space<vmem>>, %arg3: memref<3x12x128xbf16, #tpu.memory_space<vmem>>, %arg4: memref<2x128xf32, #tpu.memory_space<vmem>>, %arg5: memref<1x256x128xf32, #tpu.memory_space<vmem>>) attributes {dimension_semantics = [#tpu.dimension_semantics<parallel>, #tpu.dimension_semantics<arbitrary>], iteration_bounds = array<i64: 2, 1>, scalar_prefetch = 0 : i64, scratch_operands = 0 : i64, tpu.core_type = #tpu.core_type<tc>, window_params = [{transform_indices = @transform_0, window_bounds = array<i64: 1, 1, 288, 12>}, {transform_indices = @transform_1, window_bounds = array<i64: 3, 12, 128>}, {transform_indices = @transform_2, window_bounds = array<i64: 2, 128>}, {transform_indices = @transform_3, window_bounds = array<i64: 1, 256, 128>}]} {
    %cst = arith.constant 0.000000e+00 : f32
    %0 = vector.broadcast %cst : f32 to vector<256x128xf32>
    %c0 = arith.constant 0 : index
    %c0_0 = arith.constant 0 : index
    %c0_1 = arith.constant 0 : index
    %c0_2 = arith.constant 0 : index
    %1 = vector.load %arg2[%c0, %c0_0, %c0_1, %c0_2] : memref<1x1x288x12xbf16, #tpu.memory_space<vmem>>, vector<1x1x256x12xbf16>
    %2 = vector.shape_cast %1 : vector<1x1x256x12xbf16> to vector<256x12xbf16>
    %c0_3 = arith.constant 0 : index
    %c0_4 = arith.constant 0 : index
    %c0_5 = arith.constant 0 : index
    %3 = vector.load %arg3[%c0_3, %c0_4, %c0_5] : memref<3x12x128xbf16, #tpu.memory_space<vmem>>, vector<1x12x128xbf16>
    %4 = vector.shape_cast %3 : vector<1x12x128xbf16> to vector<12x128xbf16>
    %cst_6 = arith.constant dense<0.000000e+00> : vector<256x128xf32>
    %5 = tpu.matmul %2, %4, %cst_6 {dimension_numbers = #tpu.dot_dimension_numbers<[1], [0], [0], [1], [0, 0, 1, 1], [], []>} : vector<256x12xbf16>, vector<12x128xbf16>, vector<256x128xf32> -> vector<256x128xf32>
    %6 = arith.addf %0, %5 : vector<256x128xf32>
    %c0_7 = arith.constant 0 : index
    %c0_8 = arith.constant 0 : index
    %c16 = arith.constant 16 : index
    %c0_9 = arith.constant 0 : index
    %7 = vector.load %arg2[%c0_7, %c0_8, %c16, %c0_9] : memref<1x1x288x12xbf16, #tpu.memory_space<vmem>>, vector<1x1x256x12xbf16>
    %8 = vector.shape_cast %7 : vector<1x1x256x12xbf16> to vector<256x12xbf16>
    %c1 = arith.constant 1 : index
    %c0_10 = arith.constant 0 : index
    %c0_11 = arith.constant 0 : index
    %9 = vector.load %arg3[%c1, %c0_10, %c0_11] : memref<3x12x128xbf16, #tpu.memory_space<vmem>>, vector<1x12x128xbf16>
    %10 = vector.shape_cast %9 : vector<1x12x128xbf16> to vector<12x128xbf16>
    %cst_12 = arith.constant dense<0.000000e+00> : vector<256x128xf32>
    %11 = tpu.matmul %8, %10, %cst_12 {dimension_numbers = #tpu.dot_dimension_numbers<[1], [0], [0], [1], [0, 0, 1, 1], [], []>} : vector<256x12xbf16>, vector<12x128xbf16>, vector<256x128xf32> -> vector<256x128xf32>
    %12 = arith.addf %6, %11 : vector<256x128xf32>
    %c0_13 = arith.constant 0 : index
    %c0_14 = arith.constant 0 : index
    %c32 = arith.constant 32 : index
    %c0_15 = arith.constant 0 : index
    %13 = vector.load %arg2[%c0_13, %c0_14, %c32, %c0_15] : memref<1x1x288x12xbf16, #tpu.memory_space<vmem>>, vector<1x1x256x12xbf16>
    %14 = vector.shape_cast %13 : vector<1x1x256x12xbf16> to vector<256x12xbf16>
    %c2 = arith.constant 2 : index
    %c0_16 = arith.constant 0 : index
    %c0_17 = arith.constant 0 : index
    %15 = vector.load %arg3[%c2, %c0_16, %c0_17] : memref<3x12x128xbf16, #tpu.memory_space<vmem>>, vector<1x12x128xbf16>
    %16 = vector.shape_cast %15 : vector<1x12x128xbf16> to vector<12x128xbf16>
    %cst_18 = arith.constant dense<0.000000e+00> : vector<256x128xf32>
    %17 = tpu.matmul %14, %16, %cst_18 {dimension_numbers = #tpu.dot_dimension_numbers<[1], [0], [0], [1], [0, 0, 1, 1], [], []>} : vector<256x12xbf16>, vector<12x128xbf16>, vector<256x128xf32> -> vector<256x128xf32>
    %18 = arith.addf %12, %17 : vector<256x128xf32>
    %c0_19 = arith.constant 0 : index
    %c0_20 = arith.constant 0 : index
    %19 = vector.load %arg4[%c0_19, %c0_20] : memref<2x128xf32, #tpu.memory_space<vmem>>, vector<1x128xf32>
    %20 = vector.broadcast %19 : vector<1x128xf32> to vector<256x128xf32>
    %21 = arith.mulf %18, %20 : vector<256x128xf32>
    %c1_21 = arith.constant 1 : index
    %c0_22 = arith.constant 0 : index
    %22 = vector.load %arg4[%c1_21, %c0_22] : memref<2x128xf32, #tpu.memory_space<vmem>>, vector<1x128xf32>
    %23 = vector.broadcast %22 : vector<1x128xf32> to vector<256x128xf32>
    %24 = arith.addf %21, %23 : vector<256x128xf32>
    %cst_23 = arith.constant 0.000000e+00 : f32
    %25 = vector.broadcast %cst_23 : f32 to vector<256x128xf32>
    %26 = arith.maximumf %24, %25 : vector<256x128xf32>
    %c0_24 = arith.constant 0 : index
    %c0_25 = arith.constant 0 : index
    %c0_26 = arith.constant 0 : index
    %27 = vector.load %arg5[%c0_24, %c0_25, %c0_26] : memref<1x256x128xf32, #tpu.memory_space<vmem>>, vector<1x256x128xf32>
    %28 = vector.shape_cast %27 : vector<1x256x128xf32> to vector<256x128xf32>
    %29 = vector.shape_cast %26 : vector<256x128xf32> to vector<1x256x128xf32>
    tpu.vector_store %arg5[%c0_24, %c0_25, %c0_26], %29 {strides = array<i32>} : memref<1x256x128xf32, #tpu.memory_space<vmem>>, vector<1x256x128xf32>,
    return
  }
  func.func @transform_0(%arg0: i32, %arg1: i32) -> (i32, i32, i32, i32) {
    %c0_i32 = arith.constant 0 : i32
    %c0_i32_0 = arith.constant 0 : i32
    %c0_i32_1 = arith.constant 0 : i32
    %c0_i32_2 = arith.constant 0 : i32
    return %arg0, %c0_i32, %c0_i32_0, %c0_i32_1 : i32, i32, i32, i32
  }
  func.func @transform_1(%arg0: i32, %arg1: i32) -> (i32, i32, i32) {
    %c0_i32 = arith.constant 0 : i32
    %c0_i32_0 = arith.constant 0 : i32
    %c0_i32_1 = arith.constant 0 : i32
    return %c0_i32, %c0_i32_0, %arg1 : i32, i32, i32
  }
  func.func @transform_2(%arg0: i32, %arg1: i32) -> (i32, i32) {
    %c0_i32 = arith.constant 0 : i32
    %c0_i32_0 = arith.constant 0 : i32
    return %c0_i32, %arg1 : i32, i32
  }
  func.func @transform_3(%arg0: i32, %arg1: i32) -> (i32, i32, i32) {
    %c0_i32 = arith.constant 0 : i32
    %c0_i32_0 = arith.constant 0 : i32
    return %arg0, %c0_i32, %arg1 : i32, i32, i32
  }
}

</mosaic_0001>

<bundles_post_ra>
// kernel: _lambda_.1
= control target key start
LH: loop header
LB: loop body
LE: loop exit
PB: predicated region body
PF: predicated region fallthrough
CT: control target
= control target key end

     0   :  { %s1782_s12 = smov 0   ;;  %s1784_s13 = smov 0   ;;  %s2044_s0 = inlined_call_operand.vmem [shape: bf16[2,1,288,12], index: 0, kind: input, shape index: {}]   ;;  %s2045_s1 = inlined_call_operand.vmem [shape: bf16[3,12,128], index: 1, kind: input, shape index: {}]   ;;  %s2046_s2 = inlined_call_operand.vmem [shape: f32[2,128], index: 2, kind: input, shape index: {}]   ;;  %s2047_s3 = inlined_call_operand.vmem [shape: f32[2,256,128], index: 3, kind: output, shape index: {}]  }
   0x1   :  { %s1786_s14 = smov 0  }
   0x2 LB: > { %s25_s15 = sadd.s32 1, %s1756_s13  ;;  %p1357_p0 = scmp.ge.s32.totalorder %s1760_s14, 1  ;;  %s1760_s14 = sphi %s1786_s14, %s13_s14   ;;  %s1756_s13 = sphi %s1784_s13, %s2049_s13   ;;  %s1752_s12 = sphi %s1782_s12, %s2048_s12  }
   0x3   : > { %p27_p1 = scmp.ge.s32.totalorder %s25_s15, 2  ;;  %p169_p2 = scmp.lt.s32.totalorder %s1760_s14, 3 }
   0x5   : > { %s2051_s15 = smov (%p27_p1, %s25_s15), 0  ;;  %p170_p3 = pnand %p1357_p0, %p169_p2 }
   0x6   : > { %v1702_v0 = vld [vmem:[%s2045_s1 + $0x8] sm:$0x3f] (!%p170_p3)   ;;  %vm399_vm0 = vcmask (!%p170_p3), 1045504   ;;  %p204_p4 = scmp.lt.s32.totalorder (!%p170_p3), %s1752_s12, 1  ;;  %v1703_v1 = vld [vmem:[%s2045_s1] sm:$0x3f] (!%p170_p3)  }
   0x7   : > { %173 = sbr.rel (%p170_p3) target bundleno = 332 (0x14c), region = 32  ;;  %1673 = vmatprep.subr.msk.bf16.mxu1 (!%p170_p3), %vm399_vm0, %v1702_v0  ;;  %v401_v2 = vsel (!%p170_p3), %vm399_vm0, %v1702_v0, 0  ;;  %v1706_v3 = vld [vmem:[%s2045_s1 + $0x10] sm:$0x3f] (!%p170_p3)   ;;  %1674 = vmatprep.subr.msk.bf16.mxu0 (!%p170_p3), %vm399_vm0, %v1703_v1  ;;  %v578_v4 = vsel (!%p170_p3), %vm399_vm0, %v1703_v1, 0  ;;  %vm350_vm1 = vcmask (!%p170_p3), 97280  }
   0x8   : > { %1506 = vmatpush3.bf16.msra.mxu1 (!%p170_p3), %v401_v2  ;;  %1540 = vmatpush3.bf16.msra.mxu0 (!%p170_p3), %v578_v4  ;;  %v910_v8 = vsel (!%p170_p3), %vm399_vm0, %v1706_v3, 0  ;;  %v1920_v56 = vld [vmem:[%s2046_s2] ss:$0 sm:$0xff] (!%p170_p3)  ;;  %v1925_v59 = vld [vmem:[%s2046_s2 + $0x1] ss:$0 sm:$0xff] (!%p170_p3) }
   0x9   : > { %1675 = vmatprep.subr.msk.bf16.mxu1 (!%p170_p3), %vm399_vm0, %v1703_v1  ;;  %1676 = vmatprep.subr.msk.bf16.mxu0 (!%p170_p3), %vm399_vm0, %v1706_v3 }
   0xe   : > { %s2053_s12 = smov (!%p204_p4, %s1752_s12), 1 }
   0xf   : > { %s1677_s22 = smul.u32 144, %s2053_s12  ;;  %s1453_s30 = sshll.u32 %s2053_s12, 8 }
  0x10   : > { %s1935_s6 = scalar_lea.vmem %s2047_s3, %s1453_s30 }
  0x11   : > { %s1821_s25 = scalar_lea.vmem %s2044_s0, %s1677_s22 }
  0x12   : > { %v1704_v5 = vld [vmem:[%s1821_s25 + $0x8] sm:$0xff]   ;;  %v1705_v6 = vld [vmem:[%s1821_s25] sm:$0xff]   ;;  %v1707_v7 = vld [vmem:[%s1821_s25 + $0x10] sm:$0xff]  }
  0x13   : > { %1507 = vmatprep.mubr.msk.bf16.mxu1 %vm350_vm1, %v1704_v5  ;;  %1541 = vmatprep.mubr.msk.bf16.mxu0 %vm350_vm1, %v1705_v6  ;;  %v1708_v9 = vld [vmem:[%s1821_s25 + $0x18] sm:$0xff]   ;;  %v1709_v10 = vld [vmem:[%s1821_s25 + $0x20] sm:$0xff]   ;;  %v1710_v11 = vld [vmem:[%s1821_s25 + $0x28] sm:$0xff]  }
  0x14   : > { %1508 = vmatmul.mubr.msk.bf16.vlgmr.msra.gmra.mrb[0].mxu1 %vm350_vm1, %v1707_v7  ;;  %1542 = vmatmul.mubr.msk.bf16.vlgmr.msra.gmra.mrb[0].mxu0 %vm350_vm1, %v1704_v5  ;;  %v1711_v12 = vld [vmem:[%s1821_s25 + $0x30] sm:$0xff]   ;;  %v1712_v13 = vld [vmem:[%s1821_s25 + $0x38] sm:$0xff]   ;;  %v1713_v14 = vld [vmem:[%s1821_s25 + $0x40] sm:$0xff]  }
  0x15   : > { %1608 = vmatpush3.bf16.msra.mxu1 %v578_v4  ;;  %1574 = vmatpush3.bf16.msra.mxu0 %v910_v8  ;;  %v1714_v15 = vld [vmem:[%s1821_s25 + $0x48] sm:$0xff]   ;;  %v1715_v16 = vld [vmem:[%s1821_s25 + $0x10] sm:$0xff]   ;;  %v1717_v18 = vld [vmem:[%s1821_s25 + $0x18] sm:$0xff]  }
  0x16   : > { %1511 = vmatprep.mubr.msk.bf16.mxu1 %vm350_vm1, %v1708_v9  ;;  %1545 = vmatprep.mubr.msk.bf16.mxu0 %vm350_vm1, %v1707_v7  ;;  %v1716_v17 = vld [vmem:[%s1821_s25 + $0x50] sm:$0xff]   ;;  %v1718_v19 = vld [vmem:[%s1821_s25 + $0x58] sm:$0xff]   ;;  %v1719_v20 = vld [vmem:[%s1821_s25 + $0x20] sm:$0xff]  }
  0x17   : > { %v1720_v21 = vld [vmem:[%s1821_s25 + $0x60] sm:$0xff]   ;;  %v1721_v22 = vld [vmem:[%s1821_s25 + $0x28] sm:$0xff]   ;;  %v1723_v24 = vld [vmem:[%s1821_s25 + $0x30] sm:$0xff]  }
  0x18   : > { %v1722_v23 = vld [vmem:[%s1821_s25 + $0x68] sm:$0xff]   ;;  %v1724_v25 = vld [vmem:[%s1821_s25 + $0x70] sm:$0xff]   ;;  %v1725_v26 = vld [vmem:[%s1821_s25 + $0x38] sm:$0xff]  }
  0x19   : > { %v1726_v27 = vld [vmem:[%s1821_s25 + $0x78] sm:$0xff]   ;;  %v1727_v28 = vld [vmem:[%s1821_s25 + $0x40] sm:$0xff]   ;;  %v1729_v30 = vld [vmem:[%s1821_s25 + $0x48] sm:$0xff]  }
  0x1a   : > { %v1728_v29 = vld [vmem:[%s1821_s25 + $0x80] sm:$0xff]   ;;  %v1730_v31 = vld [vmem:[%s1821_s25 + $0x50] sm:$0xff]   ;;  %v1731_v32 = vld [vmem:[%s1821_s25 + $0x58] sm:$0xff]  }
  0x1b   : > { %v1732_v33 = vld [vmem:[%s1821_s25 + $0x60] sm:$0xff]   ;;  %v1733_v34 = vld [vmem:[%s1821_s25 + $0x68] sm:$0xff]   ;;  %v1734_v35 = vld [vmem:[%s1821_s25 + $0x70] sm:$0xff]  }
  0x1c   : > { %1512 = vmatmul.mubr.msk.bf16.gmra.mrb[4].mxu1 %vm350_vm1, %v1709_v10  ;;  %1546 = vmatmul.mubr.msk.bf16.gmra.mrb[4].mxu0 %vm350_vm1, %v1708_v9  ;;  %v1735_v36 = vld [vmem:[%s1821_s25 + $0x78] sm:$0xff]   ;;  %v1736_v37 = vld [vmem:[%s1821_s25 + $0x80] sm:$0xff]   ;;  %v1737_v38 = vld [vmem:[%s1821_s25 + $0x88] sm:$0xff]  }
  0x1d   : > { %1515 = vmatprep.mubr.msk.bf16.mxu1 %vm350_vm1, %v1710_v11  ;;  %1549 = vmatprep.mubr.msk.bf16.mxu0 %vm350_vm1, %v1709_v10 }
  0x24   : > { %1516 = vmatmul.mubr.msk.bf16.gmra.mrb[8].mxu1 %vm350_vm1, %v1711_v12  ;;  %1550 = vmatmul.mubr.msk.bf16.gmra.mrb[8].mxu0 %vm350_vm1, %v1710_v11 }
  0x25   : > { %1519 = vmatprep.mubr.msk.bf16.mxu1 %vm350_vm1, %v1712_v13  ;;  %1553 = vmatprep.mubr.msk.bf16.mxu0 %vm350_vm1, %v1711_v12 }
  0x2c   : > { %1520 = vmatmul.mubr.msk.bf16.gmra.mrb[12].mxu1 %vm350_vm1, %v1713_v14  ;;  %1554 = vmatmul.mubr.msk.bf16.gmra.mrb[12].mxu0 %vm350_vm1, %v1712_v13 }
  0x2d   : > { %1523 = vmatprep.mubr.msk.bf16.mxu1 %vm350_vm1, %v1714_v15  ;;  %1575 = vmatprep.mubr.msk.bf16.mxu0 %vm350_vm1, %v1715_v16 }
  0x34   : > { %1524 = vmatmul.mubr.msk.bf16.gmra.mrb[16].mxu1 %vm350_vm1, %v1716_v17  ;;  %1576 = vmatmul.mubr.msk.bf16.vlgmr.msra.gmra.mrb[0].mxu0 %vm350_vm1, %v1717_v18 }
  0x35   : > { %1527 = vmatprep.mubr.msk.bf16.mxu1 %vm350_vm1, %v1718_v19  ;;  %1579 = vmatprep.mubr.msk.bf16.mxu0 %vm350_vm1, %v1719_v20 }
  0x3c   : > { %1528 = vmatmul.mubr.msk.bf16.gmra.mrb[20].mxu1 %vm350_vm1, %v1720_v21  ;;  %1580 = vmatmul.mubr.msk.bf16.gmra.mrb[4].mxu0 %vm350_vm1, %v1721_v22 }
  0x3d   : > { %1531 = vmatprep.mubr.msk.bf16.mxu1 %vm350_vm1, %v1722_v23  ;;  %1583 = vmatprep.mubr.msk.bf16.mxu0 %vm350_vm1, %v1723_v24 }
  0x44   : > { %1532 = vmatmul.mubr.msk.bf16.gmra.mrb[24].mxu1 %vm350_vm1, %v1724_v25  ;;  %1584 = vmatmul.mubr.msk.bf16.gmra.mrb[8].mxu0 %vm350_vm1, %v1725_v26 }
  0x45   : > { %1535 = vmatprep.mubr.msk.bf16.mxu1 %vm350_vm1, %v1726_v27  ;;  %1587 = vmatprep.mubr.msk.bf16.mxu0 %vm350_vm1, %v1727_v28 }
  0x4c   : > { %1536 = vmatmul.mubr.msk.bf16.gmra.mrb[28].mxu1 %vm350_vm1, %v1728_v29  ;;  %1588 = vmatmul.mubr.msk.bf16.gmra.mrb[12].mxu0 %vm350_vm1, %v1729_v30 }
  0x4d   : > { %1557 = vmatprep.mubr.msk.bf16.mxu1 %vm350_vm1, %v1713_v14  ;;  %1591 = vmatprep.mubr.msk.bf16.mxu0 %vm350_vm1, %v1730_v31 }
  0x54   : > { %1558 = vmatmul.mubr.msk.bf16.vlgmr.msra.gmra.mrb[16].mxu1 %vm350_vm1, %v1714_v15  ;;  %1592 = vmatmul.mubr.msk.bf16.gmra.mrb[16].mxu0 %vm350_vm1, %v1731_v32 }
  0x55   : > { %1561 = vmatprep.mubr.msk.bf16.mxu1 %vm350_vm1, %v1716_v17  ;;  %1595 = vmatprep.mubr.msk.bf16.mxu0 %vm350_vm1, %v1732_v33 }
  0x5c   : > { %1562 = vmatmul.mubr.msk.bf16.gmra.mrb[20].mxu1 %vm350_vm1, %v1718_v19  ;;  %1596 = vmatmul.mubr.msk.bf16.gmra.mrb[20].mxu0 %vm350_vm1, %v1733_v34 }
  0x5d   : > { %1565 = vmatprep.mubr.msk.bf16.mxu1 %vm350_vm1, %v1720_v21  ;;  %1599 = vmatprep.mubr.msk.bf16.mxu0 %vm350_vm1, %v1734_v35 }
  0x64   : > { %1566 = vmatmul.mubr.msk.bf16.gmra.mrb[24].mxu1 %vm350_vm1, %v1722_v23  ;;  %1600 = vmatmul.mubr.msk.bf16.gmra.mrb[24].mxu0 %vm350_vm1, %v1735_v36 }
  0x65   : > { %1569 = vmatprep.mubr.msk.bf16.mxu1 %vm350_vm1, %v1724_v25  ;;  %1603 = vmatprep.mubr.msk.bf16.mxu0 %vm350_vm1, %v1736_v37 }
  0x6c   : > { %1570 = vmatmul.mubr.msk.bf16.gmra.mrb[28].mxu1 %vm350_vm1, %v1726_v27  ;;  %1604 = vmatmul.mubr.msk.bf16.gmra.mrb[28].mxu0 %vm350_vm1, %v1737_v38 }
  0xe7   : > { %v1509_v39 = vpop.f32.mrb[0].mxu1 }
  0xe8   : > { %v437_v40 = vpop.f32.mrb[1].mxu1 }
  0xe9   : > { %v1510_v41 = vpop.f32.mrb[2].mxu1 }
  0xea   : > { %v440_v42 = vpop.f32.mrb[3].mxu1 }
  0xef   : > { %v1513_v43 = vpop.f32.mrb[4].mxu1 }
  0xf0   : > { %v453_v44 = vpop.f32.mrb[5].mxu1 }
  0xf1   : > { %v1514_v45 = vpop.f32.mrb[6].mxu1 }
  0xf2   : > { %v456_v46 = vpop.f32.mrb[7].mxu1 }
  0xf7   : > { %v1517_v47 = vpop.f32.mrb[8].mxu1 }
  0xf8   : > { %v469_v48 = vpop.f32.mrb[9].mxu1 }
  0xf9   : > { %v1905_v49 = vpop.f32.mrb[10].mxu1 }
  0xfa   : > { %v1907_v50 = vpop.f32.mrb[11].mxu1 }
  0xff   : > { %v1909_v51 = vpop.f32.mrb[12].mxu1 }
 0x100   : > { %v1911_v52 = vpop.f32.mrb[13].mxu1 }
 0x101   : > { %v1913_v53 = vpop.f32.mrb[14].mxu1 }
 0x102   : > { %v1915_v54 = vpop.f32.mrb[15].mxu1 }
 0x107   : > { %v1577_v55 = vpop.f32.mrb[0].mxu0 }
 0x108   : > { %v1609_v57 = vadd.f32 %v1577_v55, %v1509_v39  ;;  %v946_v58 = vpop.f32.mrb[1].mxu0 }
 0x109   : > { %v1610_v60 = vadd.f32 %v946_v58, %v437_v40  ;;  %v1578_v61 = vpop.f32.mrb[2].mxu0 }
 0x10a   : > { %v1112_v62 = vmul.f32 %v1609_v57, %v1920_v56  ;;  %v1611_v63 = vadd.f32 %v1578_v61, %v1510_v41  ;;  %v949_v0 = vpop.f32.mrb[3].mxu0 }
 0x10b   : > { %v1110_v1 = vmul.f32 %v1610_v60, %v1920_v56  ;;  %v1612_v2 = vadd.f32 %v949_v0, %v440_v42 }
 0x10c   : > { %v1149_v3 = vadd.f32 %v1925_v59, %v1112_v62  ;;  %v1113_v4 = vmul.f32 %v1611_v63, %v1920_v56 }
 0x10d   : > { %v1147_v5 = vadd.f32 %v1925_v59, %v1110_v1  ;;  %v1111_v6 = vmul.f32 %v1612_v2, %v1920_v56 }
 0x10e   : > { %v1181_v7 = vmax.f32 %v1149_v3, 0.0  ;;  %v1150_v8 = vadd.f32 %v1925_v59, %v1113_v4 }
 0x10f   : > { %v1179_v9 = vmax.f32 %v1147_v5, 0.0  ;;  %v1148_v10 = vadd.f32 %v1925_v59, %v1111_v6  ;;  %v1581_v11 = vpop.f32.mrb[4].mxu0 }
 0x110   : > { %1213 = vst [vmem:[%s1935_s6 + $0x10] sm:$0xff] %v1181_v7  ;;  %v1182_v12 = vmax.f32 %v1150_v8, 0.0  ;;  %v1613_v13 = vadd.f32 %v1581_v11, %v1513_v43  ;;  %v962_v14 = vpop.f32.mrb[5].mxu0 }
 0x111   : > { %1211 = vst [vmem:[%s1935_s6] sm:$0xff] %v1179_v9  ;;  %v1180_v15 = vmax.f32 %v1148_v10, 0.0  ;;  %v1614_v16 = vadd.f32 %v962_v14, %v453_v44  ;;  %v1582_v17 = vpop.f32.mrb[6].mxu0 }
 0x112   : > { %1214 = vst [vmem:[%s1935_s6 + $0x18] sm:$0xff] %v1182_v12  ;;  %v1116_v18 = vmul.f32 %v1613_v13, %v1920_v56  ;;  %v1615_v19 = vadd.f32 %v1582_v17, %v1514_v45  ;;  %v965_v20 = vpop.f32.mrb[7].mxu0 }
 0x113   : > { %1212 = vst [vmem:[%s1935_s6 + $0x8] sm:$0xff] %v1180_v15  ;;  %v1114_v21 = vmul.f32 %v1614_v16, %v1920_v56  ;;  %v1616_v22 = vadd.f32 %v965_v20, %v456_v46 }
 0x114   : > { %v1153_v23 = vadd.f32 %v1925_v59, %v1116_v18  ;;  %v1117_v24 = vmul.f32 %v1615_v19, %v1920_v56 }
 0x115   : > { %v1151_v25 = vadd.f32 %v1925_v59, %v1114_v21  ;;  %v1115_v26 = vmul.f32 %v1616_v22, %v1920_v56 }
 0x116   : > { %v1185_v27 = vmax.f32 %v1153_v23, 0.0  ;;  %v1154_v28 = vadd.f32 %v1925_v59, %v1117_v24 }
 0x117   : > { %v1183_v29 = vmax.f32 %v1151_v25, 0.0  ;;  %v1152_v30 = vadd.f32 %v1925_v59, %v1115_v26  ;;  %v1585_v31 = vpop.f32.mrb[8].mxu0 }
 0x118   : > { %1217 = vst [vmem:[%s1935_s6 + $0x30] sm:$0xff] %v1185_v27  ;;  %v1186_v32 = vmax.f32 %v1154_v28, 0.0  ;;  %v1617_v33 = vadd.f32 %v1585_v31, %v1517_v47  ;;  %v978_v34 = vpop.f32.mrb[9].mxu0 }
 0x119   : > { %1215 = vst [vmem:[%s1935_s6 + $0x20] sm:$0xff] %v1183_v29  ;;  %v1184_v35 = vmax.f32 %v1152_v30, 0.0  ;;  %v1618_v36 = vadd.f32 %v978_v34, %v469_v48  ;;  %v1586_v37 = vpop.f32.mrb[10].mxu0 }
 0x11a   : > { %1218 = vst [vmem:[%s1935_s6 + $0x38] sm:$0xff] %v1186_v32  ;;  %v1120_v38 = vmul.f32 %v1617_v33, %v1920_v56  ;;  %v1619_v39 = vadd.f32 %v1586_v37, %v1905_v49  ;;  %v981_v40 = vpop.f32.mrb[11].mxu0 }
 0x11b   : > { %1216 = vst [vmem:[%s1935_s6 + $0x28] sm:$0xff] %v1184_v35  ;;  %v1118_v41 = vmul.f32 %v1618_v36, %v1920_v56  ;;  %v1620_v42 = vadd.f32 %v981_v40, %v1907_v50 }
 0x11c   : > { %v1157_v43 = vadd.f32 %v1925_v59, %v1120_v38  ;;  %v1121_v44 = vmul.f32 %v1619_v39, %v1920_v56 }
 0x11d   : > { %v1155_v45 = vadd.f32 %v1925_v59, %v1118_v41  ;;  %v1119_v46 = vmul.f32 %v1620_v42, %v1920_v56 }
 0x11e   : > { %v1189_v47 = vmax.f32 %v1157_v43, 0.0  ;;  %v1158_v48 = vadd.f32 %v1925_v59, %v1121_v44 }
 0x11f   : > { %v1187_v49 = vmax.f32 %v1155_v45, 0.0  ;;  %v1156_v55 = vadd.f32 %v1925_v59, %v1119_v46  ;;  %v1589_v57 = vpop.f32.mrb[12].mxu0 }
 0x120   : > { %1221 = vst [vmem:[%s1935_s6 + $0x50] sm:$0xff] %v1189_v47  ;;  %v1190_v58 = vmax.f32 %v1158_v48, 0.0  ;;  %v1621_v50 = vadd.f32 %v1589_v57, %v1909_v51  ;;  %v994_v60 = vpop.f32.mrb[13].mxu0 }
 0x121   : > { %1219 = vst [vmem:[%s1935_s6 + $0x40] sm:$0xff] %v1187_v49  ;;  %v1188_v61 = vmax.f32 %v1156_v55, 0.0  ;;  %v1622_v62 = vadd.f32 %v994_v60, %v1911_v52  ;;  %v1590_v63 = vpop.f32.mrb[14].mxu0 }
 0x122   : > { %1222 = vst [vmem:[%s1935_s6 + $0x58] sm:$0xff] %v1190_v58  ;;  %v1124_v0 = vmul.f32 %v1621_v50, %v1920_v56  ;;  %v1623_v1 = vadd.f32 %v1590_v63, %v1913_v53  ;;  %v997_v2 = vpop.f32.mrb[15].mxu0 }
 0x123   : > { %1220 = vst [vmem:[%s1935_s6 + $0x48] sm:$0xff] %v1188_v61  ;;  %v1122_v3 = vmul.f32 %v1622_v62, %v1920_v56  ;;  %v1624_v4 = vadd.f32 %v997_v2, %v1915_v54 }
 0x124   : > { %v1161_v51 = vadd.f32 %v1925_v59, %v1124_v0  ;;  %v1125_v5 = vmul.f32 %v1623_v1, %v1920_v56 }
 0x125   : > { %v1159_v52 = vadd.f32 %v1925_v59, %v1122_v3  ;;  %v1123_v6 = vmul.f32 %v1624_v4, %v1920_v56 }
 0x126   : > { %v1193_v7 = vmax.f32 %v1161_v51, 0.0  ;;  %v1162_v8 = vadd.f32 %v1925_v59, %v1125_v5 }
 0x127   : > { %v1191_v53 = vmax.f32 %v1159_v52, 0.0  ;;  %v1160_v9 = vadd.f32 %v1925_v59, %v1123_v6  ;;  %v1559_v10 = vpop.f32.mrb[16].mxu1  ;;  %v1593_v11 = vpop.f32.mrb[16].mxu0 }
 0x128   : > { %1225 = vst [vmem:[%s1935_s6 + $0x70] sm:$0xff] %v1193_v7  ;;  %v1194_v54 = vmax.f32 %v1162_v8, 0.0  ;;  %v1625_v12 = vadd.f32 %v1593_v11, %v1559_v10  ;;  %v678_v13 = vpop.f32.mrb[17].mxu1  ;;  %v1010_v14 = vpop.f32.mrb[17].mxu0 }
 0x129   : > { %1223 = vst [vmem:[%s1935_s6 + $0x60] sm:$0xff] %v1191_v53  ;;  %v1192_v15 = vmax.f32 %v1160_v9, 0.0  ;;  %v1626_v16 = vadd.f32 %v1010_v14, %v678_v13  ;;  %v1560_v17 = vpop.f32.mrb[18].mxu1  ;;  %v1594_v18 = vpop.f32.mrb[18].mxu0 }
 0x12a   : > { %1226 = vst [vmem:[%s1935_s6 + $0x78] sm:$0xff] %v1194_v54  ;;  %v1128_v19 = vmul.f32 %v1625_v12, %v1920_v56  ;;  %v1627_v20 = vadd.f32 %v1594_v18, %v1560_v17  ;;  %v681_v21 = vpop.f32.mrb[19].mxu1  ;;  %v1013_v22 = vpop.f32.mrb[19].mxu0 }
 0x12b   : > { %1224 = vst [vmem:[%s1935_s6 + $0x68] sm:$0xff] %v1192_v15  ;;  %v1126_v23 = vmul.f32 %v1626_v16, %v1920_v56  ;;  %v1628_v24 = vadd.f32 %v1013_v22, %v681_v21 }
 0x12c   : > { %v1165_v25 = vadd.f32 %v1925_v59, %v1128_v19  ;;  %v1129_v26 = vmul.f32 %v1627_v20, %v1920_v56 }
 0x12d   : > { %v1163_v27 = vadd.f32 %v1925_v59, %v1126_v23  ;;  %v1127_v28 = vmul.f32 %v1628_v24, %v1920_v56 }
 0x12e   : > { %v1197_v29 = vmax.f32 %v1165_v25, 0.0  ;;  %v1166_v30 = vadd.f32 %v1925_v59, %v1129_v26 }
 0x12f   : > { %v1195_v31 = vmax.f32 %v1163_v27, 0.0  ;;  %v1164_v32 = vadd.f32 %v1925_v59, %v1127_v28  ;;  %v1563_v33 = vpop.f32.mrb[20].mxu1  ;;  %v1597_v34 = vpop.f32.mrb[20].mxu0 }
 0x130   : > { %1229 = vst [vmem:[%s1935_s6 + $0x90] sm:$0xff] %v1197_v29  ;;  %v1198_v35 = vmax.f32 %v1166_v30, 0.0  ;;  %v1629_v36 = vadd.f32 %v1597_v34, %v1563_v33  ;;  %v694_v37 = vpop.f32.mrb[21].mxu1  ;;  %v1026_v38 = vpop.f32.mrb[21].mxu0 }
 0x131   : > { %1227 = vst [vmem:[%s1935_s6 + $0x80] sm:$0xff] %v1195_v31  ;;  %v1196_v39 = vmax.f32 %v1164_v32, 0.0  ;;  %v1630_v40 = vadd.f32 %v1026_v38, %v694_v37  ;;  %v1564_v41 = vpop.f32.mrb[22].mxu1  ;;  %v1598_v42 = vpop.f32.mrb[22].mxu0 }
 0x132   : > { %1230 = vst [vmem:[%s1935_s6 + $0x98] sm:$0xff] %v1198_v35  ;;  %v1132_v43 = vmul.f32 %v1629_v36, %v1920_v56  ;;  %v1631_v44 = vadd.f32 %v1598_v42, %v1564_v41  ;;  %v697_v45 = vpop.f32.mrb[23].mxu1  ;;  %v1029_v46 = vpop.f32.mrb[23].mxu0 }
 0x133   : > { %1228 = vst [vmem:[%s1935_s6 + $0x88] sm:$0xff] %v1196_v39  ;;  %v1130_v47 = vmul.f32 %v1630_v40, %v1920_v56  ;;  %v1632_v48 = vadd.f32 %v1029_v46, %v697_v45 }
 0x134   : > { %v1169_v49 = vadd.f32 %v1925_v59, %v1132_v43  ;;  %v1133_v55 = vmul.f32 %v1631_v44, %v1920_v56 }
 0x135   : > { %v1167_v57 = vadd.f32 %v1925_v59, %v1130_v47  ;;  %v1131_v58 = vmul.f32 %v1632_v48, %v1920_v56 }
 0x136   : > { %v1201_v50 = vmax.f32 %v1169_v49, 0.0  ;;  %v1170_v60 = vadd.f32 %v1925_v59, %v1133_v55 }
 0x137   : > { %v1199_v61 = vmax.f32 %v1167_v57, 0.0  ;;  %v1168_v62 = vadd.f32 %v1925_v59, %v1131_v58  ;;  %v1567_v63 = vpop.f32.mrb[24].mxu1  ;;  %v1601_v0 = vpop.f32.mrb[24].mxu0 }
 0x138   : > { %1233 = vst [vmem:[%s1935_s6 + $0xb0] sm:$0xff] %v1201_v50  ;;  %v1202_v1 = vmax.f32 %v1170_v60, 0.0  ;;  %v1633_v2 = vadd.f32 %v1601_v0, %v1567_v63  ;;  %v710_v3 = vpop.f32.mrb[25].mxu1  ;;  %v1042_v4 = vpop.f32.mrb[25].mxu0 }
 0x139   : > { %1231 = vst [vmem:[%s1935_s6 + $0xa0] sm:$0xff] %v1199_v61  ;;  %v1200_v51 = vmax.f32 %v1168_v62, 0.0  ;;  %v1634_v5 = vadd.f32 %v1042_v4, %v710_v3  ;;  %v1568_v52 = vpop.f32.mrb[26].mxu1  ;;  %v1602_v6 = vpop.f32.mrb[26].mxu0 }
 0x13a   : > { %1234 = vst [vmem:[%s1935_s6 + $0xb8] sm:$0xff] %v1202_v1  ;;  %v1136_v7 = vmul.f32 %v1633_v2, %v1920_v56  ;;  %v1635_v8 = vadd.f32 %v1602_v6, %v1568_v52  ;;  %v713_v53 = vpop.f32.mrb[27].mxu1  ;;  %v1045_v9 = vpop.f32.mrb[27].mxu0 }
 0x13b   : > { %1232 = vst [vmem:[%s1935_s6 + $0xa8] sm:$0xff] %v1200_v51  ;;  %v1134_v10 = vmul.f32 %v1634_v5, %v1920_v56  ;;  %v1636_v11 = vadd.f32 %v1045_v9, %v713_v53 }
 0x13c   : > { %v1173_v54 = vadd.f32 %v1925_v59, %v1136_v7  ;;  %v1137_v12 = vmul.f32 %v1635_v8, %v1920_v56 }
 0x13d   : > { %v1171_v13 = vadd.f32 %v1925_v59, %v1134_v10  ;;  %v1135_v14 = vmul.f32 %v1636_v11, %v1920_v56 }
 0x13e   : > { %v1205_v15 = vmax.f32 %v1173_v54, 0.0  ;;  %v1174_v16 = vadd.f32 %v1925_v59, %v1137_v12 }
 0x13f   : > { %v1203_v17 = vmax.f32 %v1171_v13, 0.0  ;;  %v1172_v18 = vadd.f32 %v1925_v59, %v1135_v14  ;;  %v1571_v19 = vpop.f32.mrb[28].mxu1  ;;  %v1605_v20 = vpop.f32.mrb[28].mxu0 }
 0x140   : > { %1237 = vst [vmem:[%s1935_s6 + $0xd0] sm:$0xff] %v1205_v15  ;;  %v1206_v21 = vmax.f32 %v1174_v16, 0.0  ;;  %v1637_v22 = vadd.f32 %v1605_v20, %v1571_v19  ;;  %v726_v23 = vpop.f32.mrb[29].mxu1  ;;  %v1058_v24 = vpop.f32.mrb[29].mxu0 }
 0x141   : > { %1235 = vst [vmem:[%s1935_s6 + $0xc0] sm:$0xff] %v1203_v17  ;;  %v1204_v25 = vmax.f32 %v1172_v18, 0.0  ;;  %v1638_v26 = vadd.f32 %v1058_v24, %v726_v23  ;;  %v1572_v27 = vpop.f32.mrb[30].mxu1  ;;  %v1606_v28 = vpop.f32.mrb[30].mxu0 }
 0x142   : > { %1238 = vst [vmem:[%s1935_s6 + $0xd8] sm:$0xff] %v1206_v21  ;;  %v1140_v29 = vmul.f32 %v1637_v22, %v1920_v56  ;;  %v1639_v30 = vadd.f32 %v1606_v28, %v1572_v27  ;;  %v729_v31 = vpop.f32.mrb[31].mxu1  ;;  %v1061_v32 = vpop.f32.mrb[31].mxu0 }
 0x143   : > { %1236 = vst [vmem:[%s1935_s6 + $0xc8] sm:$0xff] %v1204_v25  ;;  %v1138_v33 = vmul.f32 %v1638_v26, %v1920_v56  ;;  %v1640_v34 = vadd.f32 %v1061_v32, %v729_v31 }
 0x144   : > { %v1177_v35 = vadd.f32 %v1925_v59, %v1140_v29  ;;  %v1141_v36 = vmul.f32 %v1639_v30, %v1920_v56 }
 0x145   : > { %v1175_v37 = vadd.f32 %v1925_v59, %v1138_v33  ;;  %v1139_v38 = vmul.f32 %v1640_v34, %v1920_v56 }
 0x146   : > { %v1209_v39 = vmax.f32 %v1177_v35, 0.0  ;;  %v1178_v40 = vadd.f32 %v1925_v59, %v1141_v36 }
 0x147   : > { %v1207_v41 = vmax.f32 %v1175_v37, 0.0  ;;  %v1176_v42 = vadd.f32 %v1925_v59, %v1139_v38 }
 0x148   : > { %1241 = vst [vmem:[%s1935_s6 + $0xf0] sm:$0xff] %v1209_v39  ;;  %v1210_v43 = vmax.f32 %v1178_v40, 0.0 }
 0x149   : > { %1239 = vst [vmem:[%s1935_s6 + $0xe0] sm:$0xff] %v1207_v41  ;;  %v1208_v44 = vmax.f32 %v1176_v42, 0.0 }
 0x14a   : > { %1242 = vst [vmem:[%s1935_s6 + $0xf8] sm:$0xff] %v1210_v43 }
 0x14b   : > { %1240 = vst [vmem:[%s1935_s6 + $0xe8] sm:$0xff] %v1208_v44 }
 0x14c PF: > { %s13_s14 = sadd.s32 1, %s1760_s14   ;;  %s2048_s12 = smov %s1756_s13 }
 0x14d   : > { %p10_p5 = scmp.ge.s32.totalorder %s13_s14, 4   ;;  %s2049_s13 = smov %s2051_s15 }
 0x14f   :  { %12 = sbr.rel (!%p10_p5) target bundleno = 2 (0x2), region = 70 }

</bundles_post_ra>
